<compile_context>
chip_gen: v6e
topology: v6e:2x2x1
jax: 0.10.0
libtpu: 0.0.40
codegen_flags: <defaults>
</compile_context>

<pallas_src>
import math

import jax
import jax.numpy as jnp
from jax.experimental import pallas as pl
from jax.experimental.pallas import tpu as pltpu


def _round_up(n, m):
    return ((n + m - 1) // m) * m


# Per-lane VMEM cost of one batch tile (H = 32, f32 activations):
#   x slab   (2 -> 8 sublanes, TB) f32, double-buffered   ~  64 B/lane
#   out slab (1 -> 8 sublanes, TB) f32, double-buffered   ~  64 B/lane
#   h1, h2   (H, TB) f32 intermediates                    ~ 256 B/lane
#   h1 bf16 MXU operand cast                              ~  64 B/lane
# -> budget 512 B/lane (weights are negligible at H = 32).
_VMEM_BYTES_PER_LANE = 512
_MAX_TILE_LANES = 65536  # keeps the tile comfortably inside v7x's 64 MiB VMEM


def _pick_tiling(b_pad):
    """Generation-aware batch-tile (lane) width + scoped-VMEM limit."""
    try:
        vmem_bytes = int(pltpu.get_tpu_info().vmem_capacity_bytes)
    except Exception:  # pragma: no cover - conservative fallback (v7x-sized)
        vmem_bytes = 64 << 20

    budget = vmem_bytes // 2
    cap = max(128, min(_MAX_TILE_LANES,
                       (budget // _VMEM_BYTES_PER_LANE) // 128 * 128))

    # For mid-sized batches prefer >= 2 tiles so the "parallel" batch axis can
    # feed both TensorCores on v7x (neutral on v5e/v6e).
    tile_b = max(128, min(cap, _round_up(pl.cdiv(b_pad, 2), 128)))

    # Raise the scoped VMEM limit (defaults: 16 MiB v5e, 32 MiB v6e/v7x).
    vmem_limit = int(max(32 << 20, min(vmem_bytes * 3 // 4, 96 << 20)))
    return tile_b, vmem_limit


def _mlp_kernel(x_ref, w1_ref, b1_ref, w2_ref, b2_ref, w3_ref, b3_ref, out_ref):
    # x_ref: (2, TB)  -- batch on lanes, the two input features on sublanes.
    x0 = x_ref[0:1, :]                                   # (1, TB)
    x1 = x_ref[1:2, :]                                   # (1, TB)

    # Layer 1 on the VPU (f32): two broadcast FMAs (no K=2 padded MXU pass).
    h1 = w1_ref[:, 0:1] * x0 + w1_ref[:, 1:2] * x1 + b1_ref[...]   # (H, TB)
    h1 = jnp.maximum(h1, 0.0)

    # Layer 2 on the MXU: (H, H) @ (H, TB) -> (H, TB), lane-dense result.
    # Operands follow w2's dtype (bf16 on the fast path), accumulate in f32.
    h2 = jnp.dot(w2_ref[...], h1.astype(w2_ref.dtype),
                 preferred_element_type=jnp.float32) + b2_ref[...]
    h2 = jnp.maximum(h2, 0.0)

    # Layer 3: VPU multiply + sublane (XLU) reduce -> (1, TB) lane-dense row.
    z = jnp.sum(w3_ref[...] * h2, axis=0, keepdims=True) + b3_ref[0, 0]

    # Sigmoid: exp routed to the EUP; lane-dense unmasked store.
    out_ref[...] = jax.nn.sigmoid(z)


def prepare_params(params, *, mxu_bf16=True):
    """One-time layout prep (hoisted out of the per-call path).

    Input: PyTorch-layout params  w: (out, in), b: (out,).
    Output layout used by the kernel:
      w1: (H, 2) f32, b1: (H, 1) f32,
      w2: (H, H) bf16 (MXU operand) or f32 if mxu_bf16=False, b2: (H, 1) f32,
      w3: (H, 1) f32, b3: (1, 1) f32 (scalar -> SMEM).
    """
    H = params["w1"].shape[0]
    f32 = jnp.float32
    w2_dtype = jnp.bfloat16 if mxu_bf16 else jnp.float32
    return {
        "w1": params["w1"].astype(f32),                  # (H, 2)
        "b1": params["b1"].reshape(H, 1).astype(f32),    # (H, 1)
        "w2": params["w2"].astype(w2_dtype),             # (H, H)
        "b2": params["b2"].reshape(H, 1).astype(f32),    # (H, 1)
        "w3": params["w3"].reshape(1, H).T.astype(f32),  # (H, 1)
        "b3": params["b3"].reshape(1, 1).astype(f32),    # (1, 1)
    }


def exotic_rawnet_forward_lanes(xt, prepared):
    """Lane-dense entry point.

    xt: (2, b_pad) f32 with batch on lanes, b_pad a multiple of 128.
    Returns the lane-dense (1, b_pad) sigmoid row.
    """
    b_pad = xt.shape[1]
    assert b_pad % 128 == 0, "xt lane dimension must be padded to 128"
    H = prepared["w1"].shape[0]

    tile_b, vmem_limit = _pick_tiling(b_pad)
    num_tiles = pl.cdiv(b_pad, tile_b)   # last tile may be partial

    resident = lambda shape: pl.BlockSpec(shape, lambda i: tuple(0 for _ in shape))

    return pl.pallas_call(
        _mlp_kernel,
        out_shape=jax.ShapeDtypeStruct((1, b_pad), jnp.float32),
        grid=(num_tiles,),
        in_specs=[
            pl.BlockSpec((2, tile_b), lambda i: (0, i)),            # x slab
            resident((H, 2)),                                       # w1
            resident((H, 1)),                                       # b1
            resident((H, H)),                                       # w2
            resident((H, 1)),                                       # b2
            resident((H, 1)),                                       # w3
            pl.BlockSpec(memory_space=pltpu.MemorySpace.SMEM),      # b3 scalar
        ],
        out_specs=pl.BlockSpec((1, tile_b), lambda i: (0, i)),
        compiler_params=pltpu.CompilerParams(
            dimension_semantics=("parallel",),
            vmem_limit_bytes=vmem_limit,
        ),
    )(
        xt,
        prepared["w1"],
        prepared["b1"],
        prepared["w2"],
        prepared["b2"],
        prepared["w3"],
        prepared["b3"],
    )


def exotic_rawnet_forward(x, prepared):
    """x: (B, 2) float. prepared: output of prepare_params(). Returns (B, 1)."""
    B = x.shape[0]
    b_pad = _round_up(B, 128)   # pad only to 128, not to the (large) tile

    # Lane-dense relayout of x.  For best end-to-end perf keep x in (2, B)
    # layout upstream and call exotic_rawnet_forward_lanes() directly.
    xt = jnp.pad(x.astype(jnp.float32), ((0, b_pad - B), (0, 0))).T   # (2, b_pad)

    out_row = exotic_rawnet_forward_lanes(xt, prepared)               # (1, b_pad)

    # Back to the PyTorch (B, 1) shape, dropping batch padding.
    return out_row[0, :B].reshape(B, 1)


def _init_linear(key, out_features, in_features):
    """Deterministic PyTorch-style default init: U(-1/sqrt(fan_in), 1/sqrt(fan_in))."""
    kw, kb = jax.random.split(key)
    bound = 1.0 / math.sqrt(in_features)
    w = jax.random.uniform(kw, (out_features, in_features), jnp.float32, -bound, bound)
    b = jax.random.uniform(kb, (out_features,), jnp.float32, -bound, bound)
    return w, b


def _reference_forward(x, p):
    h1 = jnp.maximum(x @ p["w1"].T + p["b1"], 0.0)
    h2 = jnp.maximum(h1 @ p["w2"].T + p["b2"], 0.0)
    return jax.nn.sigmoid(h2 @ p["w3"].T + p["b3"])


if __name__ == "__main__":
    key = jax.random.PRNGKey(0)
    k_x, k1, k2, k3 = jax.random.split(key, 4)

    batch = 8
    num_hid = 32

    x = jax.random.normal(k_x, (batch, 2), jnp.float32)

    w1, b1 = _init_linear(k1, num_hid, 2)
    w2, b2 = _init_linear(k2, num_hid, num_hid)
    w3, b3 = _init_linear(k3, 1, num_hid)
    params = {"w1": w1, "b1": b1, "w2": w2, "b2": b2, "w3": w3, "b3": b3}

    ref = _reference_forward(x, params)

    forward = jax.jit(exotic_rawnet_forward)

    # Fast path: bf16 MXU operands, f32 accumulation / VPU math.
    prep_bf16 = jax.tree_util.tree_map(jax.block_until_ready,
                                       prepare_params(params, mxu_bf16=True))
    out_bf16 = jax.block_until_ready(forward(x, prep_bf16))
    assert out_bf16.shape == (batch, 1)
    assert jnp.allclose(out_bf16, ref, atol=1e-2, rtol=0.0), \
        "Pallas (bf16 MXU) output mismatch vs reference"

    # Parity path: all-f32 weights (default matmul precision, as before).
    prep_f32 = jax.tree_util.tree_map(jax.block_until_ready,
                                      prepare_params(params, mxu_bf16=False))
    out_f32 = jax.block_until_ready(forward(x, prep_f32))
    assert out_f32.shape == (batch, 1)
    assert jnp.allclose(out_f32, ref, atol=1e-5, rtol=1e-5), \
        "Pallas (f32 MXU) output mismatch vs reference"

    print("KERNEL_OK")
</pallas_src>

<mosaic_0001>
module attributes {stable_mosaic.version = 11 : i64} {
  func.func @_mlp_kernel(%arg0: i32, %arg1: memref<2x128xf32, #tpu.memory_space<vmem>>, %arg2: memref<32x2xf32, #tpu.memory_space<vmem>>, %arg3: memref<32x1xf32, #tpu.memory_space<vmem>>, %arg4: memref<32x32xbf16, #tpu.memory_space<vmem>>, %arg5: memref<32x1xf32, #tpu.memory_space<vmem>>, %arg6: memref<32x1xf32, #tpu.memory_space<vmem>>, %arg7: memref<1x1xf32, #tpu.memory_space<smem>>, %arg8: memref<1x128xf32, #tpu.memory_space<vmem>>) attributes {dimension_semantics = [#tpu.dimension_semantics<parallel>], iteration_bounds = array<i64: 1>, scalar_prefetch = 0 : i64, scratch_operands = 0 : i64, tpu.core_type = #tpu.core_type<tc>, window_params = [{transform_indices = @transform_0, window_bounds = array<i64: 2, 128>}, {pipeline_mode = #tpu.pipeline_mode<synchronous>, transform_indices = @transform_1, window_bounds = array<i64: 32, 2>}, {pipeline_mode = #tpu.pipeline_mode<synchronous>, transform_indices = @transform_2, window_bounds = array<i64: 32, 1>}, {pipeline_mode = #tpu.pipeline_mode<synchronous>, transform_indices = @transform_3, window_bounds = array<i64: 32, 32>}, {pipeline_mode = #tpu.pipeline_mode<synchronous>, transform_indices = @transform_4, window_bounds = array<i64: 32, 1>}, {pipeline_mode = #tpu.pipeline_mode<synchronous>, transform_indices = @transform_5, window_bounds = array<i64: 32, 1>}, {transform_indices = @transform_6, window_bounds = array<i64: 1, 1>}, {transform_indices = @transform_7, window_bounds = array<i64: 1, 128>}]} {
    %c0 = arith.constant 0 : index
    %c0_0 = arith.constant 0 : index
    %0 = vector.load %arg1[%c0, %c0_0] : memref<2x128xf32, #tpu.memory_space<vmem>>, vector<1x128xf32>
    %c1 = arith.constant 1 : index
    %c0_1 = arith.constant 0 : index
    %1 = vector.load %arg1[%c1, %c0_1] : memref<2x128xf32, #tpu.memory_space<vmem>>, vector<1x128xf32>
    %c0_2 = arith.constant 0 : index
    %c0_3 = arith.constant 0 : index
    %2 = vector.load %arg2[%c0_2, %c0_3] : memref<32x2xf32, #tpu.memory_space<vmem>>, vector<32x1xf32>
    %3 = vector.broadcast %2 : vector<32x1xf32> to vector<32x128xf32>
    %4 = vector.broadcast %0 : vector<1x128xf32> to vector<32x128xf32>
    %5 = arith.mulf %3, %4 : vector<32x128xf32>
    %c0_4 = arith.constant 0 : index
    %c1_5 = arith.constant 1 : index
    %6 = vector.load %arg2[%c0_4, %c1_5] : memref<32x2xf32, #tpu.memory_space<vmem>>, vector<32x1xf32>
    %7 = vector.broadcast %6 : vector<32x1xf32> to vector<32x128xf32>
    %8 = vector.broadcast %1 : vector<1x128xf32> to vector<32x128xf32>
    %9 = arith.mulf %7, %8 : vector<32x128xf32>
    %10 = arith.addf %5, %9 : vector<32x128xf32>
    %c0_6 = arith.constant 0 : index
    %c0_7 = arith.constant 0 : index
    %11 = vector.load %arg3[%c0_6, %c0_7] : memref<32x1xf32, #tpu.memory_space<vmem>>, vector<32x1xf32>
    %12 = vector.broadcast %11 : vector<32x1xf32> to vector<32x128xf32>
    %13 = arith.addf %10, %12 : vector<32x128xf32>
    %cst = arith.constant 0.000000e+00 : f32
    %14 = vector.broadcast %cst : f32 to vector<32x128xf32>
    %15 = arith.maximumf %13, %14 : vector<32x128xf32>
    %c0_8 = arith.constant 0 : index
    %c0_9 = arith.constant 0 : index
    %16 = vector.load %arg4[%c0_8, %c0_9] : memref<32x32xbf16, #tpu.memory_space<vmem>>, vector<32x32xbf16>
    %17 = arith.truncf %15 : vector<32x128xf32> to vector<32x128xbf16>
    %cst_10 = arith.constant dense<0.000000e+00> : vector<32x128xf32>
    %18 = tpu.matmul %16, %17, %cst_10 {dimension_numbers = #tpu.dot_dimension_numbers<[1], [0], [0], [1], [0, 0, 1, 1], [], []>} : vector<32x32xbf16>, vector<32x128xbf16>, vector<32x128xf32> -> vector<32x128xf32>
    %c0_11 = arith.constant 0 : index
    %c0_12 = arith.constant 0 : index
    %19 = vector.load %arg5[%c0_11, %c0_12] : memref<32x1xf32, #tpu.memory_space<vmem>>, vector<32x1xf32>
    %20 = vector.broadcast %19 : vector<32x1xf32> to vector<32x128xf32>
    %21 = arith.addf %18, %20 : vector<32x128xf32>
    %cst_13 = arith.constant 0.000000e+00 : f32
    %22 = vector.broadcast %cst_13 : f32 to vector<32x128xf32>
    %23 = arith.maximumf %21, %22 : vector<32x128xf32>
    %c0_14 = arith.constant 0 : index
    %c0_15 = arith.constant 0 : index
    %24 = vector.load %arg6[%c0_14, %c0_15] : memref<32x1xf32, #tpu.memory_space<vmem>>, vector<32x1xf32>
    %25 = vector.broadcast %24 : vector<32x1xf32> to vector<32x128xf32>
    %26 = arith.mulf %25, %23 : vector<32x128xf32>
    %cst_16 = arith.constant dense<0.000000e+00> : vector<128xf32>
    %27 = vector.multi_reduction <add>, %26, %cst_16 [0] : vector<32x128xf32> to vector<128xf32>
    %28 = vector.shape_cast %27 : vector<128xf32> to vector<1x128xf32>
    %c0_17 = arith.constant 0 : index
    %c0_18 = arith.constant 0 : index
    %29 = memref.load %arg7[%c0_17, %c0_18] : memref<1x1xf32, #tpu.memory_space<smem>>
    %30 = vector.broadcast %29 : f32 to vector<1x128xf32>
    %31 = arith.addf %28, %30 : vector<1x128xf32>
    %32 = arith.negf %31 : vector<1x128xf32>
    %33 = math.exp %32 : vector<1x128xf32>
    %cst_19 = arith.constant 1.000000e+00 : f32
    %34 = vector.broadcast %cst_19 : f32 to vector<1x128xf32>
    %35 = arith.addf %34, %33 : vector<1x128xf32>
    %36 = arith.divf %34, %35 : vector<1x128xf32>
    %c0_20 = arith.constant 0 : index
    %c0_21 = arith.constant 0 : index
    %37 = vector.load %arg8[%c0_20, %c0_21] : memref<1x128xf32, #tpu.memory_space<vmem>>, vector<1x128xf32>
    tpu.vector_store %arg8[%c0_20, %c0_21], %36 {strides = array<i32>} : memref<1x128xf32, #tpu.memory_space<vmem>>, vector<1x128xf32>,
    return
  }
  func.func @transform_0(%arg0: i32) -> (i32, i32) {
    %c0_i32 = arith.constant 0 : i32
    %c0_i32_0 = arith.constant 0 : i32
    return %c0_i32, %arg0 : i32, i32
  }
  func.func @transform_1(%arg0: i32) -> (i32, i32) {
    %c0_i32 = arith.constant 0 : i32
    %c0_i32_0 = arith.constant 0 : i32
    %c0_i32_1 = arith.constant 0 : i32
    return %c0_i32, %c0_i32_0 : i32, i32
  }
  func.func @transform_2(%arg0: i32) -> (i32, i32) {
    %c0_i32 = arith.constant 0 : i32
    %c0_i32_0 = arith.constant 0 : i32
    %c0_i32_1 = arith.constant 0 : i32
    return %c0_i32, %c0_i32_0 : i32, i32
  }
  func.func @transform_3(%arg0: i32) -> (i32, i32) {
    %c0_i32 = arith.constant 0 : i32
    %c0_i32_0 = arith.constant 0 : i32
    %c0_i32_1 = arith.constant 0 : i32
    return %c0_i32, %c0_i32_0 : i32, i32
  }
  func.func @transform_4(%arg0: i32) -> (i32, i32) {
    %c0_i32 = arith.constant 0 : i32
    %c0_i32_0 = arith.constant 0 : i32
    %c0_i32_1 = arith.constant 0 : i32
    return %c0_i32, %c0_i32_0 : i32, i32
  }
  func.func @transform_5(%arg0: i32) -> (i32, i32) {
    %c0_i32 = arith.constant 0 : i32
    %c0_i32_0 = arith.constant 0 : i32
    %c0_i32_1 = arith.constant 0 : i32
    return %c0_i32, %c0_i32_0 : i32, i32
  }
  func.func @transform_6(%arg0: i32) -> (i32, i32) {
    %c0_i32 = arith.constant 0 : i32
    %c0_i32_0 = arith.constant 0 : i32
    %c0_i32_1 = arith.constant 0 : i32
    return %c0_i32, %c0_i32_0 : i32, i32
  }
  func.func @transform_7(%arg0: i32) -> (i32, i32) {
    %c0_i32 = arith.constant 0 : i32
    %c0_i32_0 = arith.constant 0 : i32
    return %c0_i32, %arg0 : i32, i32
  }
}

</mosaic_0001>

<bundles_post_ra>
// kernel: exotic_rawnet_forward.1
= control target key start
LH: loop header
LB: loop body
LE: loop exit
PB: predicated region body
PF: predicated region fallthrough
CT: control target
= control target key end

     0   :  { %v306_v0 = vmov 1   ;;  %v307_v4 = vmov 0   ;;  %vm162_vm0 = vcmask 261120   ;;  %s416_s1 = inlined_call_operand.vmem [shape: f32[32,2], index: 1, kind: input, shape index: {}]   ;;  %s417_s2 = inlined_call_operand.vmem [shape: f32[32,1], index: 2, kind: input, shape index: {}]   ;;  %s418_s4 = inlined_call_operand.vmem [shape: f32[32,1], index: 4, kind: input, shape index: {}]   ;;  %s419_s5 = inlined_call_operand.vmem [shape: f32[32,1], index: 5, kind: input, shape index: {}]   ;;  %s420_s3 = inlined_call_operand.vmem [shape: bf16[32,32], index: 3, kind: input, shape index: {}]   ;;  %s421_s0 = inlined_call_operand.vmem [shape: f32[2,128], index: 0, kind: input, shape index: {}]   ;;  %s422_s6 = inlined_call_operand.<no memory space> [shape: f32[1,1], index: 6, kind: input, shape index: {}]   ;;  %s423_s7 = inlined_call_operand.vmem [shape: f32[1,128], index: 7, kind: output, shape index: {}]  }
   0x1   :  { %296 = vset.pattern.permute.xlu0 %v306_v0  ;;  %294 = vset.pattern.permute.xlu1 %v306_v0  ;;  %v32_v1 = vld [vmem:[%s416_s1 + $0x10] sm:$0xff]  ;;  %v30_v2 = vld [vmem:[%s416_s1] sm:$0xff]  ;;  %v33_v3 = vld [vmem:[%s416_s1 + $0x18] sm:$0xff] }
   0x2   :  { %71 = vperm.xlu1 %294, %v32_v1   ;;  %63 = vperm.xlu0 %296, %v30_v2   ;;  %v31_v5 = vld [vmem:[%s416_s1 + $0x8] sm:$0xff]  ;;  %v93_v6 = vld [vmem:[%s417_s2 + $0x18] sm:$0xff]  ;;  %v92_v7 = vld [vmem:[%s417_s2 + $0x10] sm:$0xff] }
   0x3   :  { %v128_v8 = vld [vmem:[%s418_s4] sm:$0xff]  ;;  %v130_v10 = vld [vmem:[%s418_s4 + $0x10] sm:$0xff]  ;;  %v91_v11 = vld [vmem:[%s417_s2 + $0x8] sm:$0xff] }
   0x4   :  { %v90_v9 = vld [vmem:[%s417_s2] sm:$0xff]  ;;  %v129_v13 = vld [vmem:[%s418_s4 + $0x8] sm:$0xff]  ;;  %v224_v14 = vld [vmem:[%s419_s5 + $0x10] sm:$0xff] }
   0x5   :  { %v222_v12 = vld [vmem:[%s419_s5] sm:$0xff]  ;;  %v131_v16 = vld [vmem:[%s418_s4 + $0x18] sm:$0xff]  ;;  %v223_v17 = vld [vmem:[%s419_s5 + $0x8] sm:$0xff] }
   0x6   :  { %75 = vperm.xlu1 %294, %v33_v3   ;;  %297 = vset.pattern.permute.xlu0 %v307_v4  ;;  %v300_v15 = vld [vmem:[%s420_s3] sm:$0xff]   ;;  %v225_v18 = vld [vmem:[%s419_s5 + $0x18] sm:$0xff]  ;;  %v301_v55 = vld [vmem:[%s420_s3 + $0x8] sm:$0xff]  }
   0x7   :  { %46 = vperm.xlu0 %297, %v32_v1   ;;  %288 = vmatprep.mubr.msk.bf16.mxu0 %vm162_vm0, %v300_v15  ;;  %v273_v25 = vld [vmem:[%s421_s0] ss:$0 sm:$0xff]  ;;  %v274_v27 = vld [vmem:[%s421_s0 + $0x1] ss:$0 sm:$0xff] }
   0xa   :  { %295 = vset.pattern.permute.xlu1 %v307_v4 }
   0xb   :  { %41 = vperm.xlu1 %295, %v31_v5   ;;  %51 = vperm.xlu0 %297, %v33_v3  }
   0xf   :  { %298 = vset.pattern.permute.xlu1 %v306_v0  ;;  %36 = vperm.xlu0 %297, %v30_v2  }
  0x10   :  { %67 = vperm.xlu1 %298, %v31_v5  }
  0x13   :  { %111 = vperm.xlu0 %297, %v93_v6  }
  0x14   :  { %299 = vset.pattern.permute.xlu1 %v307_v4 }
  0x15   :  { %106 = vperm.xlu1 %299, %v92_v7  }
  0x17   :  { %134 = vperm.xlu0 %297, %v128_v8  }
  0x19   :  { %96 = vperm.xlu1 %299, %v90_v9  }
  0x1b   :  { %144 = vperm.xlu0 %297, %v130_v10  }
  0x1d   :  { %101 = vperm.xlu1 %299, %v91_v11  }
  0x1f   :  { %228 = vperm.xlu0 %297, %v222_v12  }
  0x21   :  { %139 = vperm.xlu1 %299, %v129_v13  }
  0x23   :  { %238 = vperm.xlu0 %297, %v224_v14  }
  0x25   :  { %149 = vperm.xlu1 %299, %v131_v16  }
  0x29   :  { %233 = vperm.xlu1 %299, %v223_v17  }
  0x2d   :  { %243 = vperm.xlu1 %299, %v225_v18  }
  0x7d   :  { %v72_v19 = vpop.permute.xlu1 %71  ;;  %v64_v20 = vpop.permute.xlu0 %63 }
  0x7e   :  { %v84_v32 = vmul.f32 %v274_v27, %v72_v19  ;;  %v82_v40 = vmul.f32 %v274_v27, %v64_v20 }
  0x81   :  { %v76_v21 = vpop.permute.xlu1 %75 }
  0x82   :  { %v47_v22 = vpop.permute.xlu0 %46  ;;  %v85_v29 = vmul.f32 %v274_v27, %v76_v21 }
  0x83   :  { %v60_v30 = vmul.f32 %v273_v25, %v47_v22 }
  0x85   :  { %v88_v36 = vadd.f32 %v84_v32, %v60_v30 }
  0x86   :  { %v42_v23 = vpop.permute.xlu1 %41  ;;  %v52_v24 = vpop.permute.xlu0 %51 }
  0x87   :  { %v61_v26 = vmul.f32 %v273_v25, %v52_v24  ;;  %v59_v45 = vmul.f32 %v273_v25, %v42_v23  ;;  %v260_v24 = vstv %s422_s6 }
  0x89   :  { %v89_v33 = vadd.f32 %v85_v29, %v61_v26 }
  0x8a   :  { %v37_v28 = vpop.permute.xlu0 %36 }
  0x8b   :  { %v68_v31 = vpop.permute.xlu1 %67  ;;  %v58_v38 = vmul.f32 %v273_v25, %v37_v28 }
  0x8c   :  { %v83_v41 = vmul.f32 %v274_v27, %v68_v31 }
  0x8d   :  { %v86_v46 = vadd.f32 %v82_v40, %v58_v38 }
  0x8e   :  { %v112_v34 = vpop.permute.xlu0 %111  ;;  %v87_v49 = vadd.f32 %v83_v41, %v59_v45 }
  0x8f   :  { %v117_v35 = vadd.f32 %v112_v34, %v89_v33 }
  0x90   :  { %v107_v37 = vpop.permute.xlu1 %106 }
  0x91   :  { %v116_v39 = vadd.f32 %v107_v37, %v88_v36  ;;  %v121_v42 = vmax.f32 %v117_v35, 0.0 }
  0x92   :  { %v135_v56 = vpop.permute.xlu0 %134 }
  0x93   :  { %v120_v43 = vmax.f32 %v116_v39, 0.0 }
  0x94   :  { %v97_v44 = vpop.permute.xlu1 %96 }
  0x95   :  { %v127_v47 = vpack.c.bf16 %v121_v42, %v120_v43  ;;  %v114_v48 = vadd.f32 %v97_v44, %v86_v46 }
  0x96   :  { %v145_v58 = vpop.permute.xlu0 %144 }
  0x97   :  { %284 = vmatprep.subr.bf16.mxu0 %v127_v47  ;;  %v118_v52 = vmax.f32 %v114_v48, 0.0 }
  0x98   :  { %v102_v50 = vpop.permute.xlu1 %101  ;;  %285 = vmatpush3.bf16.msra.mxu0 %v127_v47 }
  0x99   :  { %v115_v51 = vadd.f32 %v102_v50, %v87_v49 }
  0x9a   :  { %v229_v1 = vpop.permute.xlu0 %228 }
  0x9b   :  { %v119_v53 = vmax.f32 %v115_v51, 0.0 }
  0x9c   :  { %v140_v57 = vpop.permute.xlu1 %139 }
  0x9d   :  { %v126_v54 = vpack.c.bf16 %v119_v53, %v118_v52 }
  0x9e   :  { %v239_v12 = vpop.permute.xlu0 %238 }
  0x9f   :  { %286 = vmatprep.subr.bf16.mxu0 %v126_v54 }
  0xa0   :  { %287 = vmatpush3.bf16.msra.mxu0 %v126_v54  ;;  %v150_v60 = vpop.permute.xlu1 %149 }
  0xa3   :  { %289 = vmatmul.mubr.msk.bf16.vlgmr.msra.gmra.mxu0 %vm162_vm0, %v301_v55 }
  0xa4   :  { %v234_v6 = vpop.permute.xlu1 %233 }
  0xa8   :  { %v244_v15 = vpop.permute.xlu1 %243 }
 0x163   :  { %v290_v59 = vpop.f32.mrf.mxu0 }
 0x164   :  { %v212_v0 = vadd.f32 %v290_v59, %v145_v58 }
 0x165   :  { %v203_v61 = vpop.f32.mrf.mxu0 }
 0x166   :  { %v204_v62 = vadd.f32 %v203_v61, %v135_v56  ;;  %v220_v7 = vmax.f32 %v212_v0, 0.0 }
 0x167   :  { %v291_v63 = vpop.f32.mrf.mxu0 }
 0x168   :  { %v218_v3 = vmax.f32 %v204_v62, 0.0  ;;  %v215_v4 = vadd.f32 %v291_v63, %v150_v60  ;;  %v248_v13 = vmul.f32 %v239_v12, %v220_v7 }
 0x169   :  { %v206_v2 = vpop.f32.mrf.mxu0 }
 0x16a   :  { %v207_v5 = vadd.f32 %v206_v2, %v140_v57  ;;  %v246_v9 = vmul.f32 %v229_v1, %v218_v3  ;;  %v221_v10 = vmax.f32 %v215_v4, 0.0 }
 0x16c   :  { %v219_v8 = vmax.f32 %v207_v5, 0.0  ;;  %v249_v16 = vmul.f32 %v244_v15, %v221_v10 }
 0x16e   :  { %v247_v11 = vmul.f32 %v234_v6, %v219_v8 }
 0x170   :  { %v250_v14 = vadd.f32 %v247_v11, %v246_v9 }
 0x172   :  { %v251_v17 = vadd.f32 %v250_v14, %v248_v13 }
 0x174   :  { %v252_v18 = vadd.f32 %v251_v17, %v249_v16 }
 0x176   :  { %v253_v19 = vrot.slane %v252_v18, 4 }
 0x178   :  { %v254_v20 = vadd.f32 %v253_v19, %v252_v18 }
 0x17a   :  { %v255_v21 = vrot.slane %v254_v20, 2 }
 0x17c   :  { %v256_v22 = vadd.f32 %v255_v21, %v254_v20 }
 0x17e   :  { %v257_v23 = vrot.slane %v256_v22, 1 }
 0x180   :  { %v258_v25 = vadd.f32 %v257_v23, %v256_v22 }
 0x182   :  { %v261_v26 = vadd.f32 %v260_v24, %v258_v25 }
 0x184   :  { %v279_v27 = vmul.f32 -1.442695, %v261_v26 }
 0x186   :  { %302 = vpow2.f32 %v279_v27 }
 0x193   :  { %v303_v28 = vpop.eup %302 }
 0x194   :  { %v265_v29 = vadd.f32 1.0, %v303_v28 }
 0x196   :  { %304 = vrcp.f32 %v265_v29 }
 0x1a3   :  { %v305_v30 = vpop.eup %304 }
 0x1a4   :  { %268 = vst [vmem:[%s423_s7] sm:$0x1] %v305_v30 }

</bundles_post_ra>
